<compile_context>
chip_gen: v5e
topology: v5e:2x2
jax: 0.10.0
libtpu: 0.0.40
codegen_flags: <defaults>
</compile_context>

<pallas_src>
import jax
import jax.numpy as jnp
from jax import lax
from jax.experimental import pallas as pl
from jax.experimental.pallas import tpu as pltpu

LEAK_RATE = 0.3


def _libesn_kernel(x_ref, win_t_ref, wres_t_ref, wout_sum_t_ref, b_ref, o_ref):
    x = x_ref[...]                                        # (TB, D)
    wres_t = wres_t_ref[...]                              # (R, R) hoisted

    # W_in(x) is loop-invariant in the reference code (x is never sliced by t).
    u = jnp.dot(x, win_t_ref[...],
                preferred_element_type=jnp.float32)       # (TB, R)

    n_steps = x_ref.shape[1]                              # static trip count
    a = LEAK_RATE                                         # python const, hoisted

    # Peeled first iteration: res_0 == 0  =>  W_res(res_0) == 0, so
    # res_1 = (1-a)*0 + a*tanh(u + 0) = a*tanh(u)  (bit-exact vs. reference).
    res = a * jnp.tanh(u)

    def body(_, res):
        t = jnp.tanh(u + jnp.dot(res, wres_t,
                                 preferred_element_type=jnp.float32))
        # leaky update in FMA shape: (1-a)*res + a*t == res + a*(t - res)
        return res + a * (t - res)

    # Small fixed trip count -> fully unroll so adjacent iterations' MXU / EUP /
    # VPU work can be interleaved by the LLO scheduler.
    res = lax.fori_loop(1, n_steps, body, res, unroll=True)

    # Folded output projection: res @ (WoutA + WoutB)^T + b   (no lane concat).
    o_ref[...] = (jnp.dot(res, wout_sum_t_ref[...],
                          preferred_element_type=jnp.float32)
                  + b_ref[...])                           # (TB, out) + (1, out)


def libesn_forward(x, w_in, w_res, w_out, b_out, *, batch_tile=256):
    """x: (B, D). w_in: (R, D), w_res: (R, R), w_out: (out, 2R), b_out: (out,)."""
    B, D = x.shape
    R = w_in.shape[0]
    out_dim = w_out.shape[0]

    # Pre-transposed weights so the kernel does plain `x @ W` with features on lanes.
    win_t = w_in.T                                        # (D, R)
    wres_t = w_res.T                                      # (R, R)
    # rev == res at every step, so concat+matmul folds to a summed weight half.
    wout_sum_t = (w_out[:, :R] + w_out[:, R:]).T          # (R, out)
    b = b_out.reshape(1, out_dim)                         # (1, out)

    # Tile the batch: sublane quantum is 8; one tile per grid step, "parallel"
    # so multi-TC chips (v7x) shard independent batch tiles across cores.
    bp = -(-B // 8) * 8
    tb = min(batch_tile, bp)
    bp = -(-bp // tb) * tb
    if bp != B:
        x = jnp.pad(x, ((0, bp - B), (0, 0)))

    out = pl.pallas_call(
        _libesn_kernel,
        out_shape=jax.ShapeDtypeStruct((bp, out_dim), jnp.float32),
        grid=(bp // tb,),
        in_specs=[
            pl.BlockSpec((tb, D), lambda i: (i, 0)),          # x: varies with tile
            pl.BlockSpec((D, R), lambda i: (0, 0)),           # W_in^T: resident
            pl.BlockSpec((R, R), lambda i: (0, 0)),           # W_res^T: resident
            pl.BlockSpec((R, out_dim), lambda i: (0, 0)),     # folded W_out^T
            pl.BlockSpec((1, out_dim), lambda i: (0, 0)),     # bias
        ],
        out_specs=pl.BlockSpec((tb, out_dim), lambda i: (i, 0)),
        compiler_params=pltpu.CompilerParams(
            dimension_semantics=("parallel",)),
    )(x, win_t, wres_t, wout_sum_t, b)
    return out[:B]


def libesn_reference(x, w_in, w_res, w_out, b_out):
    """Literal plain-JAX replica of the PyTorch forward (keeps both states)."""
    B = x.shape[0]
    R = w_in.shape[0]
    a = LEAK_RATE
    u = x @ w_in.T
    res = jnp.zeros((B, R), jnp.float32)
    rev = jnp.zeros((B, R), jnp.float32)
    for _ in range(x.shape[1]):
        res = (1 - a) * res + a * jnp.tanh(u + res @ w_res.T)
        rev = (1 - a) * rev + a * jnp.tanh(u + rev @ w_res.T)
    final = jnp.concatenate([res, rev], axis=1)
    return final @ w_out.T + b_out


if __name__ == "__main__":
    batch = 8
    input_dim = 16          # also the number of recurrence steps (x.shape[1])
    reservoir_size = 128
    output_dim = 2

    key = jax.random.PRNGKey(0)
    kx, k_in, k_res, k_out_w, k_out_b = jax.random.split(key, 5)

    x = jax.random.normal(kx, (batch, input_dim), dtype=jnp.float32)
    # nn.init.uniform_(-0.5, 0.5) for W_in and W_res
    w_in = jax.random.uniform(k_in, (reservoir_size, input_dim),
                              minval=-0.5, maxval=0.5, dtype=jnp.float32)
    w_res = jax.random.uniform(k_res, (reservoir_size, reservoir_size),
                               minval=-0.5, maxval=0.5, dtype=jnp.float32)
    # W_out: deterministic stand-in for torch's default Linear init
    bound = 1.0 / jnp.sqrt(2.0 * reservoir_size)
    w_out = jax.random.uniform(k_out_w, (output_dim, 2 * reservoir_size),
                               minval=-bound, maxval=bound, dtype=jnp.float32)
    b_out = jax.random.uniform(k_out_b, (output_dim,),
                               minval=-bound, maxval=bound, dtype=jnp.float32)

    out = libesn_forward(x, w_in, w_res, w_out, b_out)
    out = jax.block_until_ready(out)

    ref = libesn_reference(x, w_in, w_res, w_out, b_out)
    assert out.shape == (batch, output_dim)
    assert jnp.allclose(out, ref, atol=1e-4, rtol=1e-4), (out, ref)

    print("KERNEL_OK")
</pallas_src>

<mosaic_0001>
module attributes {stable_mosaic.version = 11 : i64} {
  func.func @_libesn_kernel(%arg0: i32, %arg1: memref<8x16xf32, #tpu.memory_space<vmem>>, %arg2: memref<16x128xf32, #tpu.memory_space<vmem>>, %arg3: memref<128x128xf32, #tpu.memory_space<vmem>>, %arg4: memref<128x2xf32, #tpu.memory_space<vmem>>, %arg5: memref<1x2xf32, #tpu.memory_space<vmem>>, %arg6: memref<8x2xf32, #tpu.memory_space<vmem>>) attributes {dimension_semantics = [#tpu.dimension_semantics<parallel>], iteration_bounds = array<i64: 1>, scalar_prefetch = 0 : i64, scratch_operands = 0 : i64, tpu.core_type = #tpu.core_type<tc>, window_params = [{transform_indices = @transform_0, window_bounds = array<i64: 8, 16>}, {pipeline_mode = #tpu.pipeline_mode<synchronous>, transform_indices = @transform_1, window_bounds = array<i64: 16, 128>}, {pipeline_mode = #tpu.pipeline_mode<synchronous>, transform_indices = @transform_2, window_bounds = array<i64: 128, 128>}, {pipeline_mode = #tpu.pipeline_mode<synchronous>, transform_indices = @transform_3, window_bounds = array<i64: 128, 2>}, {pipeline_mode = #tpu.pipeline_mode<synchronous>, transform_indices = @transform_4, window_bounds = array<i64: 1, 2>}, {transform_indices = @transform_5, window_bounds = array<i64: 8, 2>}]} {
    %c0 = arith.constant 0 : index
    %c0_0 = arith.constant 0 : index
    %0 = vector.load %arg1[%c0, %c0_0] : memref<8x16xf32, #tpu.memory_space<vmem>>, vector<8x16xf32>
    %c0_1 = arith.constant 0 : index
    %c0_2 = arith.constant 0 : index
    %1 = vector.load %arg3[%c0_1, %c0_2] : memref<128x128xf32, #tpu.memory_space<vmem>>, vector<128x128xf32>
    %c0_3 = arith.constant 0 : index
    %c0_4 = arith.constant 0 : index
    %2 = vector.load %arg2[%c0_3, %c0_4] : memref<16x128xf32, #tpu.memory_space<vmem>>, vector<16x128xf32>
    %cst = arith.constant dense<0.000000e+00> : vector<8x128xf32>
    %3 = tpu.matmul %0, %2, %cst {dimension_numbers = #tpu.dot_dimension_numbers<[1], [0], [0], [1], [0, 0, 1, 1], [], []>} : vector<8x16xf32>, vector<16x128xf32>, vector<8x128xf32> -> vector<8x128xf32>
    %4 = math.tanh %3 : vector<8x128xf32>
    %cst_5 = arith.constant 3.000000e-01 : f32
    %5 = vector.broadcast %cst_5 : f32 to vector<8x128xf32>
    %6 = arith.mulf %5, %4 : vector<8x128xf32>
    %c0_i32 = arith.constant 0 : i32
    %cst_6 = arith.constant dense<0.000000e+00> : vector<8x128xf32>
    %7 = tpu.matmul %6, %1, %cst_6 {dimension_numbers = #tpu.dot_dimension_numbers<[1], [0], [0], [1], [0, 0, 1, 1], [], []>} : vector<8x128xf32>, vector<128x128xf32>, vector<8x128xf32> -> vector<8x128xf32>
    %8 = arith.addf %3, %7 : vector<8x128xf32>
    %9 = math.tanh %8 : vector<8x128xf32>
    %10 = arith.subf %9, %6 : vector<8x128xf32>
    %cst_7 = arith.constant 3.000000e-01 : f32
    %11 = vector.broadcast %cst_7 : f32 to vector<8x128xf32>
    %12 = arith.mulf %11, %10 : vector<8x128xf32>
    %13 = arith.addf %6, %12 : vector<8x128xf32>
    %c1_i32 = arith.constant 1 : i32
    %cst_8 = arith.constant dense<0.000000e+00> : vector<8x128xf32>
    %14 = tpu.matmul %13, %1, %cst_8 {dimension_numbers = #tpu.dot_dimension_numbers<[1], [0], [0], [1], [0, 0, 1, 1], [], []>} : vector<8x128xf32>, vector<128x128xf32>, vector<8x128xf32> -> vector<8x128xf32>
    %15 = arith.addf %3, %14 : vector<8x128xf32>
    %16 = math.tanh %15 : vector<8x128xf32>
    %17 = arith.subf %16, %13 : vector<8x128xf32>
    %cst_9 = arith.constant 3.000000e-01 : f32
    %18 = vector.broadcast %cst_9 : f32 to vector<8x128xf32>
    %19 = arith.mulf %18, %17 : vector<8x128xf32>
    %20 = arith.addf %13, %19 : vector<8x128xf32>
    %c2_i32 = arith.constant 2 : i32
    %cst_10 = arith.constant dense<0.000000e+00> : vector<8x128xf32>
    %21 = tpu.matmul %20, %1, %cst_10 {dimension_numbers = #tpu.dot_dimension_numbers<[1], [0], [0], [1], [0, 0, 1, 1], [], []>} : vector<8x128xf32>, vector<128x128xf32>, vector<8x128xf32> -> vector<8x128xf32>
    %22 = arith.addf %3, %21 : vector<8x128xf32>
    %23 = math.tanh %22 : vector<8x128xf32>
    %24 = arith.subf %23, %20 : vector<8x128xf32>
    %cst_11 = arith.constant 3.000000e-01 : f32
    %25 = vector.broadcast %cst_11 : f32 to vector<8x128xf32>
    %26 = arith.mulf %25, %24 : vector<8x128xf32>
    %27 = arith.addf %20, %26 : vector<8x128xf32>
    %c3_i32 = arith.constant 3 : i32
    %cst_12 = arith.constant dense<0.000000e+00> : vector<8x128xf32>
    %28 = tpu.matmul %27, %1, %cst_12 {dimension_numbers = #tpu.dot_dimension_numbers<[1], [0], [0], [1], [0, 0, 1, 1], [], []>} : vector<8x128xf32>, vector<128x128xf32>, vector<8x128xf32> -> vector<8x128xf32>
    %29 = arith.addf %3, %28 : vector<8x128xf32>
    %30 = math.tanh %29 : vector<8x128xf32>
    %31 = arith.subf %30, %27 : vector<8x128xf32>
    %cst_13 = arith.constant 3.000000e-01 : f32
    %32 = vector.broadcast %cst_13 : f32 to vector<8x128xf32>
    %33 = arith.mulf %32, %31 : vector<8x128xf32>
    %34 = arith.addf %27, %33 : vector<8x128xf32>
    %c4_i32 = arith.constant 4 : i32
    %cst_14 = arith.constant dense<0.000000e+00> : vector<8x128xf32>
    %35 = tpu.matmul %34, %1, %cst_14 {dimension_numbers = #tpu.dot_dimension_numbers<[1], [0], [0], [1], [0, 0, 1, 1], [], []>} : vector<8x128xf32>, vector<128x128xf32>, vector<8x128xf32> -> vector<8x128xf32>
    %36 = arith.addf %3, %35 : vector<8x128xf32>
    %37 = math.tanh %36 : vector<8x128xf32>
    %38 = arith.subf %37, %34 : vector<8x128xf32>
    %cst_15 = arith.constant 3.000000e-01 : f32
    %39 = vector.broadcast %cst_15 : f32 to vector<8x128xf32>
    %40 = arith.mulf %39, %38 : vector<8x128xf32>
    %41 = arith.addf %34, %40 : vector<8x128xf32>
    %c5_i32 = arith.constant 5 : i32
    %cst_16 = arith.constant dense<0.000000e+00> : vector<8x128xf32>
    %42 = tpu.matmul %41, %1, %cst_16 {dimension_numbers = #tpu.dot_dimension_numbers<[1], [0], [0], [1], [0, 0, 1, 1], [], []>} : vector<8x128xf32>, vector<128x128xf32>, vector<8x128xf32> -> vector<8x128xf32>
    %43 = arith.addf %3, %42 : vector<8x128xf32>
    %44 = math.tanh %43 : vector<8x128xf32>
    %45 = arith.subf %44, %41 : vector<8x128xf32>
    %cst_17 = arith.constant 3.000000e-01 : f32
    %46 = vector.broadcast %cst_17 : f32 to vector<8x128xf32>
    %47 = arith.mulf %46, %45 : vector<8x128xf32>
    %48 = arith.addf %41, %47 : vector<8x128xf32>
    %c6_i32 = arith.constant 6 : i32
    %cst_18 = arith.constant dense<0.000000e+00> : vector<8x128xf32>
    %49 = tpu.matmul %48, %1, %cst_18 {dimension_numbers = #tpu.dot_dimension_numbers<[1], [0], [0], [1], [0, 0, 1, 1], [], []>} : vector<8x128xf32>, vector<128x128xf32>, vector<8x128xf32> -> vector<8x128xf32>
    %50 = arith.addf %3, %49 : vector<8x128xf32>
    %51 = math.tanh %50 : vector<8x128xf32>
    %52 = arith.subf %51, %48 : vector<8x128xf32>
    %cst_19 = arith.constant 3.000000e-01 : f32
    %53 = vector.broadcast %cst_19 : f32 to vector<8x128xf32>
    %54 = arith.mulf %53, %52 : vector<8x128xf32>
    %55 = arith.addf %48, %54 : vector<8x128xf32>
    %c7_i32 = arith.constant 7 : i32
    %cst_20 = arith.constant dense<0.000000e+00> : vector<8x128xf32>
    %56 = tpu.matmul %55, %1, %cst_20 {dimension_numbers = #tpu.dot_dimension_numbers<[1], [0], [0], [1], [0, 0, 1, 1], [], []>} : vector<8x128xf32>, vector<128x128xf32>, vector<8x128xf32> -> vector<8x128xf32>
    %57 = arith.addf %3, %56 : vector<8x128xf32>
    %58 = math.tanh %57 : vector<8x128xf32>
    %59 = arith.subf %58, %55 : vector<8x128xf32>
    %cst_21 = arith.constant 3.000000e-01 : f32
    %60 = vector.broadcast %cst_21 : f32 to vector<8x128xf32>
    %61 = arith.mulf %60, %59 : vector<8x128xf32>
    %62 = arith.addf %55, %61 : vector<8x128xf32>
    %c8_i32 = arith.constant 8 : i32
    %cst_22 = arith.constant dense<0.000000e+00> : vector<8x128xf32>
    %63 = tpu.matmul %62, %1, %cst_22 {dimension_numbers = #tpu.dot_dimension_numbers<[1], [0], [0], [1], [0, 0, 1, 1], [], []>} : vector<8x128xf32>, vector<128x128xf32>, vector<8x128xf32> -> vector<8x128xf32>
    %64 = arith.addf %3, %63 : vector<8x128xf32>
    %65 = math.tanh %64 : vector<8x128xf32>
    %66 = arith.subf %65, %62 : vector<8x128xf32>
    %cst_23 = arith.constant 3.000000e-01 : f32
    %67 = vector.broadcast %cst_23 : f32 to vector<8x128xf32>
    %68 = arith.mulf %67, %66 : vector<8x128xf32>
    %69 = arith.addf %62, %68 : vector<8x128xf32>
    %c9_i32 = arith.constant 9 : i32
    %cst_24 = arith.constant dense<0.000000e+00> : vector<8x128xf32>
    %70 = tpu.matmul %69, %1, %cst_24 {dimension_numbers = #tpu.dot_dimension_numbers<[1], [0], [0], [1], [0, 0, 1, 1], [], []>} : vector<8x128xf32>, vector<128x128xf32>, vector<8x128xf32> -> vector<8x128xf32>
    %71 = arith.addf %3, %70 : vector<8x128xf32>
    %72 = math.tanh %71 : vector<8x128xf32>
    %73 = arith.subf %72, %69 : vector<8x128xf32>
    %cst_25 = arith.constant 3.000000e-01 : f32
    %74 = vector.broadcast %cst_25 : f32 to vector<8x128xf32>
    %75 = arith.mulf %74, %73 : vector<8x128xf32>
    %76 = arith.addf %69, %75 : vector<8x128xf32>
    %c10_i32 = arith.constant 10 : i32
    %cst_26 = arith.constant dense<0.000000e+00> : vector<8x128xf32>
    %77 = tpu.matmul %76, %1, %cst_26 {dimension_numbers = #tpu.dot_dimension_numbers<[1], [0], [0], [1], [0, 0, 1, 1], [], []>} : vector<8x128xf32>, vector<128x128xf32>, vector<8x128xf32> -> vector<8x128xf32>
    %78 = arith.addf %3, %77 : vector<8x128xf32>
    %79 = math.tanh %78 : vector<8x128xf32>
    %80 = arith.subf %79, %76 : vector<8x128xf32>
    %cst_27 = arith.constant 3.000000e-01 : f32
    %81 = vector.broadcast %cst_27 : f32 to vector<8x128xf32>
    %82 = arith.mulf %81, %80 : vector<8x128xf32>
    %83 = arith.addf %76, %82 : vector<8x128xf32>
    %c11_i32 = arith.constant 11 : i32
    %cst_28 = arith.constant dense<0.000000e+00> : vector<8x128xf32>
    %84 = tpu.matmul %83, %1, %cst_28 {dimension_numbers = #tpu.dot_dimension_numbers<[1], [0], [0], [1], [0, 0, 1, 1], [], []>} : vector<8x128xf32>, vector<128x128xf32>, vector<8x128xf32> -> vector<8x128xf32>
    %85 = arith.addf %3, %84 : vector<8x128xf32>
    %86 = math.tanh %85 : vector<8x128xf32>
    %87 = arith.subf %86, %83 : vector<8x128xf32>
    %cst_29 = arith.constant 3.000000e-01 : f32
    %88 = vector.broadcast %cst_29 : f32 to vector<8x128xf32>
    %89 = arith.mulf %88, %87 : vector<8x128xf32>
    %90 = arith.addf %83, %89 : vector<8x128xf32>
    %c12_i32 = arith.constant 12 : i32
    %cst_30 = arith.constant dense<0.000000e+00> : vector<8x128xf32>
    %91 = tpu.matmul %90, %1, %cst_30 {dimension_numbers = #tpu.dot_dimension_numbers<[1], [0], [0], [1], [0, 0, 1, 1], [], []>} : vector<8x128xf32>, vector<128x128xf32>, vector<8x128xf32> -> vector<8x128xf32>
    %92 = arith.addf %3, %91 : vector<8x128xf32>
    %93 = math.tanh %92 : vector<8x128xf32>
    %94 = arith.subf %93, %90 : vector<8x128xf32>
    %cst_31 = arith.constant 3.000000e-01 : f32
    %95 = vector.broadcast %cst_31 : f32 to vector<8x128xf32>
    %96 = arith.mulf %95, %94 : vector<8x128xf32>
    %97 = arith.addf %90, %96 : vector<8x128xf32>
    %c13_i32 = arith.constant 13 : i32
    %cst_32 = arith.constant dense<0.000000e+00> : vector<8x128xf32>
    %98 = tpu.matmul %97, %1, %cst_32 {dimension_numbers = #tpu.dot_dimension_numbers<[1], [0], [0], [1], [0, 0, 1, 1], [], []>} : vector<8x128xf32>, vector<128x128xf32>, vector<8x128xf32> -> vector<8x128xf32>
    %99 = arith.addf %3, %98 : vector<8x128xf32>
    %100 = math.tanh %99 : vector<8x128xf32>
    %101 = arith.subf %100, %97 : vector<8x128xf32>
    %cst_33 = arith.constant 3.000000e-01 : f32
    %102 = vector.broadcast %cst_33 : f32 to vector<8x128xf32>
    %103 = arith.mulf %102, %101 : vector<8x128xf32>
    %104 = arith.addf %97, %103 : vector<8x128xf32>
    %c14_i32 = arith.constant 14 : i32
    %cst_34 = arith.constant dense<0.000000e+00> : vector<8x128xf32>
    %105 = tpu.matmul %104, %1, %cst_34 {dimension_numbers = #tpu.dot_dimension_numbers<[1], [0], [0], [1], [0, 0, 1, 1], [], []>} : vector<8x128xf32>, vector<128x128xf32>, vector<8x128xf32> -> vector<8x128xf32>
    %106 = arith.addf %3, %105 : vector<8x128xf32>
    %107 = math.tanh %106 : vector<8x128xf32>
    %108 = arith.subf %107, %104 : vector<8x128xf32>
    %cst_35 = arith.constant 3.000000e-01 : f32
    %109 = vector.broadcast %cst_35 : f32 to vector<8x128xf32>
    %110 = arith.mulf %109, %108 : vector<8x128xf32>
    %111 = arith.addf %104, %110 : vector<8x128xf32>
    %c0_36 = arith.constant 0 : index
    %c0_37 = arith.constant 0 : index
    %112 = vector.load %arg4[%c0_36, %c0_37] : memref<128x2xf32, #tpu.memory_space<vmem>>, vector<128x2xf32>
    %cst_38 = arith.constant dense<0.000000e+00> : vector<8x2xf32>
    %113 = tpu.matmul %111, %112, %cst_38 {dimension_numbers = #tpu.dot_dimension_numbers<[1], [0], [0], [1], [0, 0, 1, 1], [], []>} : vector<8x128xf32>, vector<128x2xf32>, vector<8x2xf32> -> vector<8x2xf32>
    %c0_39 = arith.constant 0 : index
    %c0_40 = arith.constant 0 : index
    %114 = vector.load %arg5[%c0_39, %c0_40] : memref<1x2xf32, #tpu.memory_space<vmem>>, vector<1x2xf32>
    %115 = vector.broadcast %114 : vector<1x2xf32> to vector<8x2xf32>
    %116 = arith.addf %113, %115 : vector<8x2xf32>
    %c0_41 = arith.constant 0 : index
    %c0_42 = arith.constant 0 : index
    %117 = vector.load %arg6[%c0_41, %c0_42] : memref<8x2xf32, #tpu.memory_space<vmem>>, vector<8x2xf32>
    tpu.vector_store %arg6[%c0_41, %c0_42], %116 {strides = array<i32>} : memref<8x2xf32, #tpu.memory_space<vmem>>, vector<8x2xf32>,
    return
  }
  func.func @transform_0(%arg0: i32) -> (i32, i32) {
    %c0_i32 = arith.constant 0 : i32
    %c0_i32_0 = arith.constant 0 : i32
    return %arg0, %c0_i32 : i32, i32
  }
  func.func @transform_1(%arg0: i32) -> (i32, i32) {
    %c0_i32 = arith.constant 0 : i32
    %c0_i32_0 = arith.constant 0 : i32
    %c0_i32_1 = arith.constant 0 : i32
    return %c0_i32, %c0_i32_0 : i32, i32
  }
  func.func @transform_2(%arg0: i32) -> (i32, i32) {
    %c0_i32 = arith.constant 0 : i32
    %c0_i32_0 = arith.constant 0 : i32
    %c0_i32_1 = arith.constant 0 : i32
    return %c0_i32, %c0_i32_0 : i32, i32
  }
  func.func @transform_3(%arg0: i32) -> (i32, i32) {
    %c0_i32 = arith.constant 0 : i32
    %c0_i32_0 = arith.constant 0 : i32
    %c0_i32_1 = arith.constant 0 : i32
    return %c0_i32, %c0_i32_0 : i32, i32
  }
  func.func @transform_4(%arg0: i32) -> (i32, i32) {
    %c0_i32 = arith.constant 0 : i32
    %c0_i32_0 = arith.constant 0 : i32
    %c0_i32_1 = arith.constant 0 : i32
    return %c0_i32, %c0_i32_0 : i32, i32
  }
  func.func @transform_5(%arg0: i32) -> (i32, i32) {
    %c0_i32 = arith.constant 0 : i32
    %c0_i32_0 = arith.constant 0 : i32
    return %arg0, %c0_i32 : i32, i32
  }
}

</mosaic_0001>

<bundles_post_ra>
// kernel: tpu_custom_call.1
= control target key start
LH: loop header
LB: loop body
LE: loop exit
PB: predicated region body
PF: predicated region fallthrough
CT: control target
= control target key end

     0   :  { %10 = vsyncpa [#allocation3], 0  ;;  %s1040_s0 = inlined_call_operand.hbm [shape: f32[8,16], index: 0, kind: input, shape index: {}]   ;;  %s1041_s1 = inlined_call_operand.hbm [shape: f32[16,128], index: 1, kind: input, shape index: {}]   ;;  %s1042_s2 = inlined_call_operand.vmem [shape: f32[128,128], index: 2, kind: input, shape index: {}]   ;;  %s1043_s3 = inlined_call_operand.vmem [shape: f32[128,2], index: 3, kind: input, shape index: {}]   ;;  %s1044_s4 = inlined_call_operand.vmem [shape: f32[1,2], index: 4, kind: input, shape index: {}]   ;;  %s1045_s5 = inlined_call_operand.vmem [shape: f32[8,2], index: 5, kind: output, shape index: {}]  }
   0x1   :  { %s17_s20 = sshll.u32 %s1040_s0, 4  ;;  %s18_s20 = int_to_ptr.hbm [resolvable:$true] %s17_s20 }
   0x2   :  { %11 = vsyncpa [#allocation5], 0  ;;  %s608_s21 = smov [#allocation2]   ;;  %s27_s25 = sshll.u32 %s1041_s1, 4  ;;  %s28_s25 = int_to_ptr.hbm [resolvable:$true] %s27_s25 }
   0x3   :  { %s19_s22 = sshll.u32 %s608_s21, 4  ;;  %s609_s26 = smov [#allocation4]   ;;  %s20_s22 = int_to_ptr.vmem [resolvable:$true] %s19_s22 }
   0x4   :  { %22 = dma.hbm_to_vmem [thread:$0]  %s18_s20, 128, %s20_s22, [#allocation3]  }
   0x5   :  { %s29_s27 = sshll.u32 %s609_s26, 4  ;;  %s610_s28 = smov 128   ;;  %s30_s27 = int_to_ptr.vmem [resolvable:$true] %s29_s27 }
   0x6   :  { %s611_s29 = smov 8  }
   0x7   :  { %35 = dma.hbm_to_vmem [thread:$0]  %s28_s25, 256, %s30_s27, [#allocation5], %s610_s28, %s610_s28, %s611_s29  }
   0x8   :  { %604 = dma.done.wait [#allocation3], 128  }
   0x9   :  { %605 = vsyncadd [#allocation3], 4294967168 }
   0xa   :  { %606 = dma.done.wait [#allocation5], 256  }
   0xb   :  { %607 = vsyncadd [#allocation5], 4294967040  ;;  %v68_v0 = vld [vmem:[#allocation4 + $0x8] sm:$0xff]  ;;  %v67_v1 = vld [vmem:[#allocation4] sm:$0xff]  ;;  %vm69_vm0 = vcmask 130048   ;;  %vm510_vm1 = vcmask 15360  }
   0xc   :  { %87 = vmatpush.msra.mxu0 %v68_v0  ;;  %v50_v2 = vld [vmem:[#allocation2] sm:$0xff]  ;;  %v651_v3 = vld [vmem:[%s1042_s2 + $0x78] sm:$0xff]  ;;  %v656_v4 = vld [vmem:[%s1042_s2 + $0x70] sm:$0xff] }
   0xd   :  { %95 = vmatpush.msra.mxu1 %v651_v3  ;;  %120 = vmatpush.msra.mxu2 %v651_v3  ;;  %v663_v5 = vld [vmem:[%s1042_s2 + $0x68] sm:$0xff]  ;;  %v670_v6 = vld [vmem:[%s1042_s2 + $0x60] sm:$0xff]  ;;  %v679_v7 = vld [vmem:[%s1042_s2 + $0x58] sm:$0xff] }
   0xe   :  { %88 = vmatpush.msra.mxu0 %v67_v1  ;;  %145 = vmatpush.msra.mxu3 %v651_v3  ;;  %v688_v8 = vld [vmem:[%s1042_s2 + $0x50] sm:$0xff]  ;;  %v697_v9 = vld [vmem:[%s1042_s2 + $0x48] sm:$0xff]  ;;  %v706_v10 = vld [vmem:[%s1042_s2 + $0x40] sm:$0xff] }
   0xf   :  { %518 = vmatmul.msk.f32.vlgmr.msra.gmra.mxu0 %vm69_vm0, %v50_v2  ;;  %96 = vmatpush.msra.mxu1 %v656_v4  ;;  %v715_v11 = vld [vmem:[%s1042_s2 + $0x38] sm:$0xff]  ;;  %v724_v12 = vld [vmem:[%s1042_s2 + $0x30] sm:$0xff]  ;;  %v733_v13 = vld [vmem:[%s1042_s2 + $0x28] sm:$0xff] }
  0x10   :  { %121 = vmatpush.msra.mxu2 %v656_v4  ;;  %146 = vmatpush.msra.mxu3 %v656_v4  ;;  %v750_v14 = vld [vmem:[%s1042_s2 + $0x20] sm:$0xff]  ;;  %v755_v15 = vld [vmem:[%s1042_s2 + $0x18] sm:$0xff]  ;;  %v762_v16 = vld [vmem:[%s1042_s2 + $0x10] sm:$0xff] }
  0x11   :  { %97 = vmatpush.msra.mxu1 %v663_v5  ;;  %170 = vmatpush.msrb.mxu0 %v651_v3  ;;  %v771_v17 = vld [vmem:[%s1042_s2 + $0x8] sm:$0xff]  ;;  %v780_v18 = vld [vmem:[%s1042_s2] sm:$0xff] }
  0x12   :  { %122 = vmatpush.msra.mxu2 %v663_v5  ;;  %147 = vmatpush.msra.mxu3 %v663_v5 }
  0x13   :  { %98 = vmatpush.msra.mxu1 %v670_v6  ;;  %171 = vmatpush.msrb.mxu0 %v656_v4 }
  0x14   :  { %123 = vmatpush.msra.mxu2 %v670_v6  ;;  %148 = vmatpush.msra.mxu3 %v670_v6 }
  0x15   :  { %99 = vmatpush.msra.mxu1 %v679_v7  ;;  %172 = vmatpush.msrb.mxu0 %v663_v5 }
  0x16   :  { %124 = vmatpush.msra.mxu2 %v679_v7  ;;  %149 = vmatpush.msra.mxu3 %v679_v7 }
  0x17   :  { %100 = vmatpush.msra.mxu1 %v688_v8  ;;  %173 = vmatpush.msrb.mxu0 %v670_v6 }
  0x18   :  { %125 = vmatpush.msra.mxu2 %v688_v8  ;;  %150 = vmatpush.msra.mxu3 %v688_v8 }
  0x19   :  { %101 = vmatpush.msra.mxu1 %v697_v9  ;;  %174 = vmatpush.msrb.mxu0 %v679_v7 }
  0x1a   :  { %126 = vmatpush.msra.mxu2 %v697_v9  ;;  %151 = vmatpush.msra.mxu3 %v697_v9 }
  0x1b   :  { %102 = vmatpush.msra.mxu1 %v706_v10  ;;  %175 = vmatpush.msrb.mxu0 %v688_v8 }
  0x1c   :  { %127 = vmatpush.msra.mxu2 %v706_v10  ;;  %152 = vmatpush.msra.mxu3 %v706_v10 }
  0x1d   :  { %103 = vmatpush.msra.mxu1 %v715_v11  ;;  %176 = vmatpush.msrb.mxu0 %v697_v9 }
  0x1e   :  { %128 = vmatpush.msra.mxu2 %v715_v11  ;;  %153 = vmatpush.msra.mxu3 %v715_v11 }
  0x1f   :  { %104 = vmatpush.msra.mxu1 %v724_v12  ;;  %177 = vmatpush.msrb.mxu0 %v706_v10 }
  0x20   :  { %129 = vmatpush.msra.mxu2 %v724_v12  ;;  %154 = vmatpush.msra.mxu3 %v724_v12 }
  0x21   :  { %105 = vmatpush.msra.mxu1 %v733_v13  ;;  %178 = vmatpush.msrb.mxu0 %v715_v11 }
  0x22   :  { %130 = vmatpush.msra.mxu2 %v733_v13  ;;  %155 = vmatpush.msra.mxu3 %v733_v13 }
  0x23   :  { %179 = vmatpush.msrb.mxu0 %v724_v12  ;;  %106 = vmatpush.msra.mxu1 %v750_v14 }
  0x24   :  { %131 = vmatpush.msra.mxu2 %v750_v14  ;;  %156 = vmatpush.msra.mxu3 %v750_v14 }
  0x25   :  { %180 = vmatpush.msrb.mxu0 %v733_v13  ;;  %107 = vmatpush.msra.mxu1 %v755_v15 }
  0x26   :  { %132 = vmatpush.msra.mxu2 %v755_v15  ;;  %157 = vmatpush.msra.mxu3 %v755_v15 }
  0x27   :  { %181 = vmatpush.msrb.mxu0 %v750_v14  ;;  %108 = vmatpush.msra.mxu1 %v762_v16 }
  0x28   :  { %133 = vmatpush.msra.mxu2 %v762_v16  ;;  %158 = vmatpush.msra.mxu3 %v762_v16 }
  0x29   :  { %182 = vmatpush.msrb.mxu0 %v755_v15  ;;  %109 = vmatpush.msra.mxu1 %v771_v17 }
  0x2a   :  { %134 = vmatpush.msra.mxu2 %v771_v17  ;;  %159 = vmatpush.msra.mxu3 %v771_v17 }
  0x2b   :  { %183 = vmatpush.msrb.mxu0 %v762_v16  ;;  %110 = vmatpush.msra.mxu1 %v780_v18 }
  0x2c   :  { %135 = vmatpush.msra.mxu2 %v780_v18  ;;  %160 = vmatpush.msra.mxu3 %v780_v18 }
  0x2d   :  { %184 = vmatpush.msrb.mxu0 %v771_v17  ;;  %195 = vmatpush.msrb.mxu1 %v651_v3 }
  0x2e   :  { %220 = vmatpush.msrb.mxu2 %v651_v3  ;;  %245 = vmatpush.msrb.mxu3 %v651_v3 }
  0x2f   :  { %185 = vmatpush.msrb.mxu0 %v780_v18  ;;  %196 = vmatpush.msrb.mxu1 %v656_v4 }
  0x30   :  { %221 = vmatpush.msrb.mxu2 %v656_v4  ;;  %246 = vmatpush.msrb.mxu3 %v656_v4 }
  0x31   :  { %270 = vmatpush.msra.mxu0 %v651_v3  ;;  %197 = vmatpush.msrb.mxu1 %v663_v5 }
  0x32   :  { %222 = vmatpush.msrb.mxu2 %v663_v5  ;;  %247 = vmatpush.msrb.mxu3 %v663_v5 }
  0x33   :  { %271 = vmatpush.msra.mxu0 %v656_v4  ;;  %198 = vmatpush.msrb.mxu1 %v670_v6 }
  0x34   :  { %223 = vmatpush.msrb.mxu2 %v670_v6  ;;  %248 = vmatpush.msrb.mxu3 %v670_v6 }
  0x35   :  { %272 = vmatpush.msra.mxu0 %v663_v5  ;;  %199 = vmatpush.msrb.mxu1 %v679_v7 }
  0x36   :  { %224 = vmatpush.msrb.mxu2 %v679_v7  ;;  %249 = vmatpush.msrb.mxu3 %v679_v7 }
  0x37   :  { %273 = vmatpush.msra.mxu0 %v670_v6  ;;  %200 = vmatpush.msrb.mxu1 %v688_v8 }
  0x38   :  { %225 = vmatpush.msrb.mxu2 %v688_v8  ;;  %250 = vmatpush.msrb.mxu3 %v688_v8 }
  0x39   :  { %274 = vmatpush.msra.mxu0 %v679_v7  ;;  %201 = vmatpush.msrb.mxu1 %v697_v9 }
  0x3a   :  { %226 = vmatpush.msrb.mxu2 %v697_v9  ;;  %251 = vmatpush.msrb.mxu3 %v697_v9 }
  0x3b   :  { %275 = vmatpush.msra.mxu0 %v688_v8  ;;  %202 = vmatpush.msrb.mxu1 %v706_v10 }
  0x3c   :  { %227 = vmatpush.msrb.mxu2 %v706_v10  ;;  %252 = vmatpush.msrb.mxu3 %v706_v10 }
  0x3d   :  { %276 = vmatpush.msra.mxu0 %v697_v9  ;;  %203 = vmatpush.msrb.mxu1 %v715_v11 }
  0x3e   :  { %228 = vmatpush.msrb.mxu2 %v715_v11  ;;  %253 = vmatpush.msrb.mxu3 %v715_v11 }
  0x3f   :  { %277 = vmatpush.msra.mxu0 %v706_v10  ;;  %204 = vmatpush.msrb.mxu1 %v724_v12 }
  0x40   :  { %229 = vmatpush.msrb.mxu2 %v724_v12  ;;  %254 = vmatpush.msrb.mxu3 %v724_v12 }
  0x41   :  { %278 = vmatpush.msra.mxu0 %v715_v11  ;;  %205 = vmatpush.msrb.mxu1 %v733_v13 }
  0x42   :  { %230 = vmatpush.msrb.mxu2 %v733_v13  ;;  %255 = vmatpush.msrb.mxu3 %v733_v13 }
  0x43   :  { %279 = vmatpush.msra.mxu0 %v724_v12  ;;  %206 = vmatpush.msrb.mxu1 %v750_v14 }
  0x44   :  { %231 = vmatpush.msrb.mxu2 %v750_v14  ;;  %256 = vmatpush.msrb.mxu3 %v750_v14 }
  0x45   :  { %280 = vmatpush.msra.mxu0 %v733_v13  ;;  %207 = vmatpush.msrb.mxu1 %v755_v15 }
  0x46   :  { %232 = vmatpush.msrb.mxu2 %v755_v15  ;;  %257 = vmatpush.msrb.mxu3 %v755_v15 }
  0x47   :  { %281 = vmatpush.msra.mxu0 %v750_v14  ;;  %208 = vmatpush.msrb.mxu1 %v762_v16 }
  0x48   :  { %233 = vmatpush.msrb.mxu2 %v762_v16  ;;  %258 = vmatpush.msrb.mxu3 %v762_v16 }
  0x49   :  { %282 = vmatpush.msra.mxu0 %v755_v15  ;;  %209 = vmatpush.msrb.mxu1 %v771_v17 }
  0x4a   :  { %234 = vmatpush.msrb.mxu2 %v771_v17  ;;  %259 = vmatpush.msrb.mxu3 %v771_v17 }
  0x4b   :  { %283 = vmatpush.msra.mxu0 %v762_v16  ;;  %210 = vmatpush.msrb.mxu1 %v780_v18 }
  0x4c   :  { %235 = vmatpush.msrb.mxu2 %v780_v18  ;;  %260 = vmatpush.msrb.mxu3 %v780_v18 }
  0x4d   :  { %284 = vmatpush.msra.mxu0 %v771_v17 }
  0x4f   :  { %285 = vmatpush.msra.mxu0 %v780_v18 }
  0x8c   :  { %v834_v19 = vpop.f32.mrf.mxu0 }
  0x8d   :  { %524 = vtanh.f32 %v834_v19 }
  0x93   :  { %v525_v20 = vpop.eup %524 }
  0x94   :  { %v94_v21 = vmul.f32 0.3, %v525_v20 }
  0x96   :  { %111 = vmatmul.f32.vlgmr.msra.gmra.mxu1 %v94_v21 }
  0x97   :  { %295 = vmatpush.msra.mxu1 %v651_v3 }
  0x99   :  { %296 = vmatpush.msra.mxu1 %v656_v4 }
  0x9b   :  { %297 = vmatpush.msra.mxu1 %v663_v5 }
  0x9d   :  { %298 = vmatpush.msra.mxu1 %v670_v6 }
  0x9f   :  { %299 = vmatpush.msra.mxu1 %v679_v7 }
  0xa1   :  { %300 = vmatpush.msra.mxu1 %v688_v8 }
  0xa3   :  { %301 = vmatpush.msra.mxu1 %v697_v9 }
  0xa5   :  { %302 = vmatpush.msra.mxu1 %v706_v10 }
  0xa7   :  { %303 = vmatpush.msra.mxu1 %v715_v11 }
  0xa9   :  { %304 = vmatpush.msra.mxu1 %v724_v12 }
  0xab   :  { %305 = vmatpush.msra.mxu1 %v733_v13 }
  0xad   :  { %306 = vmatpush.msra.mxu1 %v750_v14 }
  0xaf   :  { %307 = vmatpush.msra.mxu1 %v755_v15 }
  0xb1   :  { %308 = vmatpush.msra.mxu1 %v762_v16 }
  0xb3   :  { %309 = vmatpush.msra.mxu1 %v771_v17 }
  0xb5   :  { %310 = vmatpush.msra.mxu1 %v780_v18 }
 0x113   :  { %v112_v22 = vpop.f32.mrf.mxu1 }
 0x114   :  { %v115_v23 = vadd.f32 %v112_v22, %v834_v19 }
 0x116   :  { %526 = vtanh.f32 %v115_v23 }
 0x11c   :  { %v527_v24 = vpop.eup %526 }
 0x11d   :  { %v117_v25 = vsub.f32 %v527_v24, %v94_v21 }
 0x11f   :  { %v118_v26 = vmul.f32 0.3, %v117_v25 }
 0x121   :  { %v119_v27 = vadd.f32 %v118_v26, %v94_v21 }
 0x123   :  { %136 = vmatmul.f32.vlgmr.msra.gmra.mxu2 %v119_v27 }
 0x124   :  { %320 = vmatpush.msra.mxu2 %v651_v3 }
 0x126   :  { %321 = vmatpush.msra.mxu2 %v656_v4 }
 0x128   :  { %322 = vmatpush.msra.mxu2 %v663_v5 }
 0x12a   :  { %323 = vmatpush.msra.mxu2 %v670_v6 }
 0x12c   :  { %324 = vmatpush.msra.mxu2 %v679_v7 }
 0x12e   :  { %325 = vmatpush.msra.mxu2 %v688_v8 }
 0x130   :  { %326 = vmatpush.msra.mxu2 %v697_v9 }
 0x132   :  { %327 = vmatpush.msra.mxu2 %v706_v10 }
 0x134   :  { %328 = vmatpush.msra.mxu2 %v715_v11 }
 0x136   :  { %329 = vmatpush.msra.mxu2 %v724_v12 }
 0x138   :  { %330 = vmatpush.msra.mxu2 %v733_v13 }
 0x13a   :  { %331 = vmatpush.msra.mxu2 %v750_v14 }
 0x13c   :  { %332 = vmatpush.msra.mxu2 %v755_v15 }
 0x13e   :  { %333 = vmatpush.msra.mxu2 %v762_v16 }
 0x140   :  { %334 = vmatpush.msra.mxu2 %v771_v17 }
 0x142   :  { %335 = vmatpush.msra.mxu2 %v780_v18 }
 0x1a6   :  { %v137_v28 = vpop.f32.mrf.mxu2 }
 0x1a7   :  { %v140_v29 = vadd.f32 %v137_v28, %v834_v19 }
 0x1a9   :  { %528 = vtanh.f32 %v140_v29 }
 0x1af   :  { %v529_v30 = vpop.eup %528 }
 0x1b0   :  { %v142_v31 = vsub.f32 %v529_v30, %v119_v27 }
 0x1b2   :  { %v143_v32 = vmul.f32 0.3, %v142_v31 }
 0x1b4   :  { %v144_v33 = vadd.f32 %v143_v32, %v119_v27 }
 0x1b6   :  { %161 = vmatmul.f32.vlgmr.msra.gmra.mxu3 %v144_v33 }
 0x1b7   :  { %345 = vmatpush.msra.mxu3 %v651_v3 }
 0x1b9   :  { %346 = vmatpush.msra.mxu3 %v656_v4 }
 0x1bb   :  { %347 = vmatpush.msra.mxu3 %v663_v5 }
 0x1bd   :  { %348 = vmatpush.msra.mxu3 %v670_v6 }
 0x1bf   :  { %349 = vmatpush.msra.mxu3 %v679_v7 }
 0x1c1   :  { %350 = vmatpush.msra.mxu3 %v688_v8 }
 0x1c3   :  { %351 = vmatpush.msra.mxu3 %v697_v9 }
 0x1c5   :  { %352 = vmatpush.msra.mxu3 %v706_v10 }
 0x1c7   :  { %353 = vmatpush.msra.mxu3 %v715_v11 }
 0x1c9   :  { %354 = vmatpush.msra.mxu3 %v724_v12 }
 0x1cb   :  { %355 = vmatpush.msra.mxu3 %v733_v13 }
 0x1cd   :  { %356 = vmatpush.msra.mxu3 %v750_v14 }
 0x1cf   :  { %357 = vmatpush.msra.mxu3 %v755_v15 }
 0x1d1   :  { %358 = vmatpush.msra.mxu3 %v762_v16 }
 0x1d3   :  { %359 = vmatpush.msra.mxu3 %v771_v17 }
 0x1d5   :  { %360 = vmatpush.msra.mxu3 %v780_v18 }
 0x239   :  { %v162_v34 = vpop.f32.mrf.mxu3 }
 0x23a   :  { %v165_v35 = vadd.f32 %v162_v34, %v834_v19 }
 0x23c   :  { %530 = vtanh.f32 %v165_v35 }
 0x242   :  { %v531_v36 = vpop.eup %530 }
 0x243   :  { %v167_v37 = vsub.f32 %v531_v36, %v144_v33 }
 0x245   :  { %v168_v38 = vmul.f32 0.3, %v167_v37  ;;  %v485_v37 = vld [vmem:[%s1043_s3 + $0x78] sm:$0xff] }
 0x247   :  { %v169_v39 = vadd.f32 %v168_v38, %v144_v33  ;;  %v484_v38 = vld [vmem:[%s1043_s3 + $0x70] sm:$0xff] }
 0x249   :  { %186 = vmatmul.f32.vlgmr.msrb.gmra.mxu0 %v169_v39 }
 0x24a   :  { %370 = vmatpush.msrb.mxu0 %v651_v3 }
 0x24c   :  { %371 = vmatpush.msrb.mxu0 %v656_v4 }
 0x24e   :  { %372 = vmatpush.msrb.mxu0 %v663_v5 }
 0x250   :  { %373 = vmatpush.msrb.mxu0 %v670_v6 }
 0x252   :  { %374 = vmatpush.msrb.mxu0 %v679_v7 }
 0x254   :  { %375 = vmatpush.msrb.mxu0 %v688_v8 }
 0x256   :  { %376 = vmatpush.msrb.mxu0 %v697_v9 }
 0x258   :  { %377 = vmatpush.msrb.mxu0 %v706_v10 }
 0x25a   :  { %378 = vmatpush.msrb.mxu0 %v715_v11 }
 0x25c   :  { %379 = vmatpush.msrb.mxu0 %v724_v12 }
 0x25e   :  { %380 = vmatpush.msrb.mxu0 %v733_v13 }
 0x260   :  { %381 = vmatpush.msrb.mxu0 %v750_v14 }
 0x262   :  { %382 = vmatpush.msrb.mxu0 %v755_v15 }
 0x264   :  { %383 = vmatpush.msrb.mxu0 %v762_v16 }
 0x266   :  { %384 = vmatpush.msrb.mxu0 %v771_v17 }
 0x268   :  { %385 = vmatpush.msrb.mxu0 %v780_v18 }
 0x2c6   :  { %v187_v40 = vpop.f32.mrf.mxu0 }
 0x2c7   :  { %v190_v41 = vadd.f32 %v187_v40, %v834_v19  ;;  %v482_v40 = vld [vmem:[%s1043_s3 + $0x60] sm:$0xff] }
 0x2c9   :  { %532 = vtanh.f32 %v190_v41  ;;  %v481_v41 = vld [vmem:[%s1043_s3 + $0x58] sm:$0xff] }
 0x2cf   :  { %v533_v42 = vpop.eup %532 }
 0x2d0   :  { %v192_v43 = vsub.f32 %v533_v42, %v169_v39  ;;  %v480_v42 = vld [vmem:[%s1043_s3 + $0x50] sm:$0xff] }
 0x2d2   :  { %v193_v44 = vmul.f32 0.3, %v192_v43  ;;  %v479_v43 = vld [vmem:[%s1043_s3 + $0x48] sm:$0xff] }
 0x2d4   :  { %v194_v45 = vadd.f32 %v193_v44, %v169_v39  ;;  %v483_v39 = vld [vmem:[%s1043_s3 + $0x68] sm:$0xff]  ;;  %v478_v44 = vld [vmem:[%s1043_s3 + $0x40] sm:$0xff] }
 0x2d6   :  { %211 = vmatmul.f32.vlgmr.msrb.gmra.mxu1 %v194_v45 }
 0x2d7   :  { %395 = vmatpush.msrb.mxu1 %v651_v3 }
 0x2d9   :  { %396 = vmatpush.msrb.mxu1 %v656_v4 }
 0x2db   :  { %397 = vmatpush.msrb.mxu1 %v663_v5 }
 0x2dd   :  { %398 = vmatpush.msrb.mxu1 %v670_v6 }
 0x2df   :  { %399 = vmatpush.msrb.mxu1 %v679_v7 }
 0x2e1   :  { %400 = vmatpush.msrb.mxu1 %v688_v8 }
 0x2e3   :  { %401 = vmatpush.msrb.mxu1 %v697_v9 }
 0x2e5   :  { %402 = vmatpush.msrb.mxu1 %v706_v10 }
 0x2e7   :  { %403 = vmatpush.msrb.mxu1 %v715_v11 }
 0x2e9   :  { %404 = vmatpush.msrb.mxu1 %v724_v12 }
 0x2eb   :  { %405 = vmatpush.msrb.mxu1 %v733_v13 }
 0x2ed   :  { %406 = vmatpush.msrb.mxu1 %v750_v14 }
 0x2ef   :  { %407 = vmatpush.msrb.mxu1 %v755_v15 }
 0x2f1   :  { %408 = vmatpush.msrb.mxu1 %v762_v16 }
 0x2f3   :  { %409 = vmatpush.msrb.mxu1 %v771_v17 }
 0x2f5   :  { %410 = vmatpush.msrb.mxu1 %v780_v18 }
 0x353   :  { %v212_v46 = vpop.f32.mrf.mxu1 }
 0x354   :  { %v215_v47 = vadd.f32 %v212_v46, %v834_v19 }
 0x356   :  { %534 = vtanh.f32 %v215_v47 }
 0x35c   :  { %v535_v48 = vpop.eup %534 }
 0x35d   :  { %v217_v49 = vsub.f32 %v535_v48, %v194_v45 }
 0x35f   :  { %v218_v50 = vmul.f32 0.3, %v217_v49 }
 0x361   :  { %v219_v51 = vadd.f32 %v218_v50, %v194_v45 }
 0x363   :  { %236 = vmatmul.f32.vlgmr.msrb.gmra.mxu2 %v219_v51 }
 0x364   :  { %420 = vmatpush.msrb.mxu2 %v651_v3 }
 0x366   :  { %421 = vmatpush.msrb.mxu2 %v656_v4 }
 0x368   :  { %422 = vmatpush.msrb.mxu2 %v663_v5 }
 0x36a   :  { %423 = vmatpush.msrb.mxu2 %v670_v6 }
 0x36c   :  { %424 = vmatpush.msrb.mxu2 %v679_v7 }
 0x36e   :  { %425 = vmatpush.msrb.mxu2 %v688_v8 }
 0x370   :  { %426 = vmatpush.msrb.mxu2 %v697_v9 }
 0x372   :  { %427 = vmatpush.msrb.mxu2 %v706_v10 }
 0x374   :  { %428 = vmatpush.msrb.mxu2 %v715_v11 }
 0x376   :  { %429 = vmatpush.msrb.mxu2 %v724_v12 }
 0x378   :  { %430 = vmatpush.msrb.mxu2 %v733_v13 }
 0x37a   :  { %431 = vmatpush.msrb.mxu2 %v750_v14 }
 0x37c   :  { %432 = vmatpush.msrb.mxu2 %v755_v15 }
 0x37e   :  { %433 = vmatpush.msrb.mxu2 %v762_v16 }
 0x380   :  { %434 = vmatpush.msrb.mxu2 %v771_v17 }
 0x382   :  { %435 = vmatpush.msrb.mxu2 %v780_v18 }
 0x3e6   :  { %v237_v52 = vpop.f32.mrf.mxu2 }
 0x3e7   :  { %v240_v53 = vadd.f32 %v237_v52, %v834_v19  ;;  %v476_v52 = vld [vmem:[%s1043_s3 + $0x30] sm:$0xff] }
 0x3e9   :  { %536 = vtanh.f32 %v240_v53  ;;  %v475_v53 = vld [vmem:[%s1043_s3 + $0x28] sm:$0xff] }
 0x3ef   :  { %v537_v54 = vpop.eup %536 }
 0x3f0   :  { %v242_v55 = vsub.f32 %v537_v54, %v219_v51  ;;  %v474_v54 = vld [vmem:[%s1043_s3 + $0x20] sm:$0xff] }
 0x3f2   :  { %v243_v56 = vmul.f32 0.3, %v242_v55  ;;  %v473_v55 = vld [vmem:[%s1043_s3 + $0x18] sm:$0xff] }
 0x3f4   :  { %v244_v57 = vadd.f32 %v243_v56, %v219_v51  ;;  %v477_v51 = vld [vmem:[%s1043_s3 + $0x38] sm:$0xff]  ;;  %v472_v56 = vld [vmem:[%s1043_s3 + $0x10] sm:$0xff] }
 0x3f6   :  { %261 = vmatmul.f32.vlgmr.msrb.gmra.mxu3 %v244_v57 }
 0x3f7   :  { %445 = vmatpush.msrb.mxu3 %v651_v3 }
 0x3f9   :  { %446 = vmatpush.msrb.mxu3 %v656_v4 }
 0x3fb   :  { %447 = vmatpush.msrb.mxu3 %v663_v5 }
 0x3fd   :  { %448 = vmatpush.msrb.mxu3 %v670_v6 }
 0x3ff   :  { %449 = vmatpush.msrb.mxu3 %v679_v7 }
 0x401   :  { %450 = vmatpush.msrb.mxu3 %v688_v8 }
 0x403   :  { %451 = vmatpush.msrb.mxu3 %v697_v9 }
 0x405   :  { %452 = vmatpush.msrb.mxu3 %v706_v10 }
 0x407   :  { %453 = vmatpush.msrb.mxu3 %v715_v11 }
 0x409   :  { %454 = vmatpush.msrb.mxu3 %v724_v12 }
 0x40b   :  { %455 = vmatpush.msrb.mxu3 %v733_v13 }
 0x40d   :  { %456 = vmatpush.msrb.mxu3 %v750_v14 }
 0x40f   :  { %457 = vmatpush.msrb.mxu3 %v755_v15 }
 0x411   :  { %458 = vmatpush.msrb.mxu3 %v762_v16 }
 0x413   :  { %459 = vmatpush.msrb.mxu3 %v771_v17 }
 0x415   :  { %460 = vmatpush.msrb.mxu3 %v780_v18 }
 0x479   :  { %v262_v58 = vpop.f32.mrf.mxu3 }
 0x47a   :  { %v265_v59 = vadd.f32 %v262_v58, %v834_v19  ;;  %v470_v58 = vld [vmem:[%s1043_s3] sm:$0xff] }
 0x47c   :  { %538 = vtanh.f32 %v265_v59 }
 0x482   :  { %v539_v60 = vpop.eup %538 }
 0x483   :  { %v267_v61 = vsub.f32 %v539_v60, %v244_v57 }
 0x485   :  { %v268_v62 = vmul.f32 0.3, %v267_v61 }
 0x487   :  { %v269_v63 = vadd.f32 %v268_v62, %v244_v57  ;;  %v471_v57 = vld [vmem:[%s1043_s3 + $0x8] sm:$0xff] }
 0x489   :  { %286 = vmatmul.f32.vlgmr.msra.gmra.mxu0 %v269_v63 }
 0x48a   :  { %490 = vmatpush.msra.mxu0 %v485_v37 }
 0x48c   :  { %491 = vmatpush.msra.mxu0 %v484_v38 }
 0x48e   :  { %492 = vmatpush.msra.mxu0 %v483_v39 }
 0x490   :  { %493 = vmatpush.msra.mxu0 %v482_v40 }
 0x492   :  { %494 = vmatpush.msra.mxu0 %v481_v41 }
 0x494   :  { %495 = vmatpush.msra.mxu0 %v480_v42 }
 0x496   :  { %496 = vmatpush.msra.mxu0 %v479_v43 }
 0x498   :  { %497 = vmatpush.msra.mxu0 %v478_v44 }
 0x49a   :  { %498 = vmatpush.msra.mxu0 %v477_v51 }
 0x49c   :  { %499 = vmatpush.msra.mxu0 %v476_v52 }
 0x49e   :  { %500 = vmatpush.msra.mxu0 %v475_v53 }
 0x4a0   :  { %501 = vmatpush.msra.mxu0 %v474_v54 }
 0x4a2   :  { %502 = vmatpush.msra.mxu0 %v473_v55 }
 0x4a4   :  { %503 = vmatpush.msra.mxu0 %v472_v56 }
 0x4a6   :  { %504 = vmatpush.msra.mxu0 %v471_v57 }
 0x4a8   :  { %505 = vmatpush.msra.mxu0 %v470_v58 }
 0x506   :  { %v287_v0 = vpop.f32.mrf.mxu0 }
 0x507   :  { %v290_v1 = vadd.f32 %v287_v0, %v834_v19 }
 0x509   :  { %540 = vtanh.f32 %v290_v1  ;;  %v523_v1 = vld [vmem:[%s1044_s4] ss:$0 sm:$0xff] }
 0x50f   :  { %v541_v2 = vpop.eup %540 }
 0x510   :  { %v292_v3 = vsub.f32 %v541_v2, %v269_v63 }
 0x512   :  { %v293_v4 = vmul.f32 0.3, %v292_v3 }
 0x514   :  { %v294_v5 = vadd.f32 %v293_v4, %v269_v63 }
 0x516   :  { %311 = vmatmul.f32.vlgmr.msra.gmra.mxu1 %v294_v5 }
 0x593   :  { %v312_v6 = vpop.f32.mrf.mxu1 }
 0x594   :  { %v315_v7 = vadd.f32 %v312_v6, %v834_v19 }
 0x596   :  { %542 = vtanh.f32 %v315_v7 }
 0x59c   :  { %v543_v8 = vpop.eup %542 }
 0x59d   :  { %v317_v9 = vsub.f32 %v543_v8, %v294_v5 }
 0x59f   :  { %v318_v10 = vmul.f32 0.3, %v317_v9 }
 0x5a1   :  { %v319_v11 = vadd.f32 %v318_v10, %v294_v5 }
 0x5a3   :  { %336 = vmatmul.f32.vlgmr.msra.gmra.mxu2 %v319_v11 }
 0x626   :  { %v337_v12 = vpop.f32.mrf.mxu2 }
 0x627   :  { %v340_v13 = vadd.f32 %v337_v12, %v834_v19 }
 0x629   :  { %544 = vtanh.f32 %v340_v13 }
 0x62f   :  { %v545_v14 = vpop.eup %544 }
 0x630   :  { %v342_v15 = vsub.f32 %v545_v14, %v319_v11 }
 0x632   :  { %v343_v16 = vmul.f32 0.3, %v342_v15 }
 0x634   :  { %v344_v17 = vadd.f32 %v343_v16, %v319_v11 }
 0x636   :  { %361 = vmatmul.f32.vlgmr.msra.gmra.mxu3 %v344_v17 }
 0x6b9   :  { %v362_v18 = vpop.f32.mrf.mxu3 }
 0x6ba   :  { %v365_v20 = vadd.f32 %v362_v18, %v834_v19 }
 0x6bc   :  { %546 = vtanh.f32 %v365_v20 }
 0x6c2   :  { %v547_v21 = vpop.eup %546 }
 0x6c3   :  { %v367_v22 = vsub.f32 %v547_v21, %v344_v17 }
 0x6c5   :  { %v368_v23 = vmul.f32 0.3, %v367_v22 }
 0x6c7   :  { %v369_v24 = vadd.f32 %v368_v23, %v344_v17 }
 0x6c9   :  { %386 = vmatmul.f32.vlgmr.msrb.gmra.mxu0 %v369_v24 }
 0x746   :  { %v387_v25 = vpop.f32.mrf.mxu0 }
 0x747   :  { %v390_v26 = vadd.f32 %v387_v25, %v834_v19 }
 0x749   :  { %548 = vtanh.f32 %v390_v26 }
 0x74f   :  { %v549_v27 = vpop.eup %548 }
 0x750   :  { %v392_v28 = vsub.f32 %v549_v27, %v369_v24 }
 0x752   :  { %v393_v29 = vmul.f32 0.3, %v392_v28 }
 0x754   :  { %v394_v30 = vadd.f32 %v393_v29, %v369_v24 }
 0x756   :  { %411 = vmatmul.f32.vlgmr.msrb.gmra.mxu1 %v394_v30 }
 0x7d3   :  { %v412_v31 = vpop.f32.mrf.mxu1 }
 0x7d4   :  { %v415_v32 = vadd.f32 %v412_v31, %v834_v19 }
 0x7d6   :  { %550 = vtanh.f32 %v415_v32 }
 0x7dc   :  { %v551_v33 = vpop.eup %550 }
 0x7dd   :  { %v417_v34 = vsub.f32 %v551_v33, %v394_v30 }
 0x7df   :  { %v418_v35 = vmul.f32 0.3, %v417_v34 }
 0x7e1   :  { %v419_v36 = vadd.f32 %v418_v35, %v394_v30 }
 0x7e3   :  { %436 = vmatmul.f32.vlgmr.msrb.gmra.mxu2 %v419_v36 }
 0x866   :  { %v437_v45 = vpop.f32.mrf.mxu2 }
 0x867   :  { %v440_v46 = vadd.f32 %v437_v45, %v834_v19 }
 0x869   :  { %552 = vtanh.f32 %v440_v46 }
 0x86f   :  { %v553_v47 = vpop.eup %552 }
 0x870   :  { %v442_v48 = vsub.f32 %v553_v47, %v419_v36 }
 0x872   :  { %v443_v49 = vmul.f32 0.3, %v442_v48 }
 0x874   :  { %v444_v50 = vadd.f32 %v443_v49, %v419_v36 }
 0x876   :  { %461 = vmatmul.f32.vlgmr.msrb.gmra.mxu3 %v444_v50 }
 0x8f9   :  { %v462_v59 = vpop.f32.mrf.mxu3 }
 0x8fa   :  { %v465_v60 = vadd.f32 %v462_v59, %v834_v19 }
 0x8fc   :  { %554 = vtanh.f32 %v465_v60 }
 0x902   :  { %v555_v61 = vpop.eup %554 }
 0x903   :  { %v467_v62 = vsub.f32 %v555_v61, %v444_v50 }
 0x905   :  { %v468_v63 = vmul.f32 0.3, %v467_v62 }
 0x907   :  { %v469_v0 = vadd.f32 %v468_v63, %v444_v50 }
 0x909   :  { %506 = vmatmul.f32.vlgmr.msra.gmra.mxu0 %v469_v0 }
 0x986   :  { %v507_v2 = vpop.f32.mrf.mxu0 }
 0x987   :  { %v508_v3 = vadd.f32 %v523_v1, %v507_v2 }
 0x989   :  { %511 = vst.msk [vmem:[%s1045_s5] sm:$0xff] %vm510_vm1, %v508_v3 }
 0x98a   :  { %516 = vsyncpa [#allocation3], 1 }
 0x98b   :  { %517 = vsyncpa [#allocation5], 1 }

</bundles_post_ra>
